<compile_context>
chip_gen: v7x
topology: tpu7x:2x2x1
jax: 0.10.0
libtpu: 0.0.40
codegen_flags: <defaults>
</compile_context>

<pallas_src>
import functools

import jax
import jax.numpy as jnp
from jax.experimental import pallas as pl
from jax.experimental.pallas import tpu as pltpu


def _round_up(n, m):
    return ((n + m - 1) // m) * m


def _fused_mlp_kernel(*refs, relu_flags, pre_relu):
    # refs = (x_ref, w1_ref, b1_ref, w2_ref, b2_ref, ..., o_ref)
    x_ref = refs[0]
    o_ref = refs[-1]
    wb = refs[1:-1]

    h = x_ref[...]
    if pre_relu:
        # Fused into the kernel (rides the VPU slot) instead of a separate XLA pass over x.
        h = jnp.maximum(h, 0.0)
    for li, fuse_relu in enumerate(relu_flags):
        w = wb[2 * li][...]          # [Din_i, Dout_i], VMEM-resident across grid steps
        b = wb[2 * li + 1][...]      # [1, Dout_i], f32
        h = jnp.dot(h.astype(w.dtype), w, preferred_element_type=jnp.float32)
        h = h + b.astype(jnp.float32)
        if fuse_relu:
            h = jnp.maximum(h, 0.0)
    o_ref[...] = h.astype(o_ref.dtype)


def fused_mlp_pallas(x, weights, biases, relu_flags, pre_relu, block_m):
    """Single pallas_call running the whole linear/ReLU chain.

    x:       [pB, in_dim]   (pB = grid * block_m, block_m multiple of 8; in_dim natural)
    weights: tuple of [Din_i, Dout_i]  (hidden dims padded to 128; first K / last N natural)
    biases:  tuple of [1, Dout_i]      (f32)
    """
    pB, in_dim = x.shape
    out_dim = weights[-1].shape[1]
    grid = (pB // block_m,)

    # x streams with its natural feature width (last dim == full array dim is legal < 128).
    # TODO(synk): if per-step DMA latency shows up at large B, add
    # pipeline_mode=pl.Buffered(3) on this x BlockSpec only.
    in_specs = [pl.BlockSpec((block_m, in_dim), lambda i: (i, 0))]
    inputs = [x]
    for w, b in zip(weights, biases):
        # Constant block index -> weights/biases stay VMEM-resident, no per-step re-DMA.
        in_specs.append(pl.BlockSpec(w.shape, lambda i: (0, 0)))
        in_specs.append(pl.BlockSpec(b.shape, lambda i: (0, 0)))
        inputs.append(w)
        inputs.append(b)

    kernel = functools.partial(_fused_mlp_kernel, relu_flags=relu_flags, pre_relu=pre_relu)
    return pl.pallas_call(
        kernel,
        out_shape=jax.ShapeDtypeStruct((pB, out_dim), x.dtype),
        grid=grid,
        in_specs=in_specs,
        # Natural out_dim on the output: far fewer HBM bytes than 128-lane padding when
        # out_dim << 128, and no post-kernel slice pass over padded lanes.
        out_specs=pl.BlockSpec((block_m, out_dim), lambda i: (i, 0)),
        compiler_params=pltpu.CompilerParams(
            dimension_semantics=("parallel",),     # batch tiles shard across v7x TensorCores
            vmem_limit_bytes=32 * 1024 * 1024,     # explicit headroom (v5e default is 16 MiB)
        ),
    )(*inputs)


@functools.partial(jax.jit, static_argnames=("relu_flags", "pre_relu"))
def _forward_jit(x, weights, biases, *, relu_flags, pre_relu):
    B = x.shape[0]
    if x.dtype != weights[0].dtype:
        x = x.astype(weights[0].dtype)   # bf16 storage path: halves streamed x bytes

    # Batch tiling:
    #  * cap block_m at 1024 rows (amortizes ~0.35us/step overhead; ~86% of HBM roofline)
    #  * force >= 2 tiles whenever the batch can split into two 8-aligned tiles, so the
    #    "parallel" grid axis actually gives the second v7x TensorCore work
    #  * derive block_m from cdiv so batch over-padding is bounded by < block_m rows
    #    (never the ~2x blow-up of round_up(B, 1024) on unlucky batch sizes).
    b8 = _round_up(B, 8)
    n_tiles = max(pl.cdiv(b8, 1024), 2 if b8 >= 16 else 1)
    block_m = _round_up(pl.cdiv(b8, n_tiles), 8)
    pB = n_tiles * block_m

    if pB != B:
        x = jnp.zeros((pB, x.shape[1]), x.dtype).at[:B].set(x)
    out = fused_mlp_pallas(x, weights, biases, relu_flags, pre_relu, block_m)
    return out[:B] if pB != B else out


class ForwardArchitecture:
    """JAX/Pallas port of the generic Sequential wrapper.

    `structure` is a list of layer descriptors:
        ("linear", W [in,out], b [out])   -> fused matmul + bias on the MXU
        ("relu",)                         -> fused into the preceding linear (or the input)
    The whole chain is compiled into a single Pallas kernel with VMEM-resident weights and
    intermediates; only internal hidden dims are lane-padded to 128.
    """

    def __init__(self, structure, param_dtype=jnp.float32):
        self.architecture = list(structure)

        layers = []          # [(W [in,out], b [out], fuse_relu)]
        self._pre_relu = False
        i, n = 0, len(structure)
        while i < n:
            kind = structure[i][0]
            if kind == "linear":
                _, w, b = structure[i]
                fuse_relu = (i + 1 < n) and (structure[i + 1][0] == "relu")
                layers.append((jnp.asarray(w), jnp.asarray(b), fuse_relu))
                i += 2 if fuse_relu else 1
            elif kind == "relu":
                if not layers:
                    self._pre_relu = True      # ReLU before any linear -> fused onto x load
                # else: ReLU after an already-ReLU'd output -> idempotent, skip
                i += 1
            else:
                # TODO(synk): other nn layer types in `structure` are not instantiated here.
                raise NotImplementedError(kind)
        if not layers:
            raise ValueError("structure must contain at least one linear layer")

        dims = [layers[0][0].shape[0]] + [w.shape[1] for (w, _, _) in layers]
        # Pad only the INTERNAL hidden dims to 128 lanes (weights are tiny and resident);
        # the streamed input K and the stored output N keep their natural widths.
        pdims = (
            [int(dims[0])]
            + [_round_up(int(d), 128) for d in dims[1:-1]]
            + [int(dims[-1])]
        )
        self.in_dim = int(dims[0])
        self.out_dim = int(dims[-1])

        padded_ws, padded_bs, flags = [], [], []
        for li, (w, b, f) in enumerate(layers):
            pw = jnp.zeros((pdims[li], pdims[li + 1]), jnp.float32)
            pw = pw.at[: w.shape[0], : w.shape[1]].set(w.astype(jnp.float32))
            pb = jnp.zeros((1, pdims[li + 1]), jnp.float32)
            pb = pb.at[0, : b.shape[0]].set(b.astype(jnp.float32))
            padded_ws.append(pw.astype(param_dtype))   # bf16 storage optional (v6e/v7x)
            padded_bs.append(pb)                       # biases stay f32 (added post-MXU)
            flags.append(bool(f))
        self._weights = tuple(padded_ws)
        self._biases = tuple(padded_bs)
        self._relu_flags = tuple(flags)

    def forward(self, x):
        return _forward_jit(
            x,
            self._weights,
            self._biases,
            relu_flags=self._relu_flags,
            pre_relu=self._pre_relu,
        )

    def __call__(self, x):
        return self.forward(x)


def _init_linear(key, din, dout, dtype=jnp.float32):
    # Deterministic init mimicking nn.Linear's uniform(-1/sqrt(in), 1/sqrt(in)).
    kw, kb = jax.random.split(key)
    bound = 1.0 / jnp.sqrt(din)
    w = jax.random.uniform(kw, (din, dout), dtype, -bound, bound)
    b = jax.random.uniform(kb, (dout,), dtype, -bound, bound)
    return w, b


if __name__ == "__main__":
    key = jax.random.PRNGKey(0)
    k_x, k1, k2, k3 = jax.random.split(key, 4)

    batch, hidden, mid, out_dim = 64, 32, 64, 16
    x = jax.random.normal(k_x, (batch, hidden), jnp.float32)

    w1, b1 = _init_linear(k1, hidden, mid)
    w2, b2 = _init_linear(k2, mid, mid)
    w3, b3 = _init_linear(k3, mid, out_dim)

    structure = [
        ("linear", w1, b1),
        ("relu",),
        ("linear", w2, b2),
        ("relu",),
        ("linear", w3, b3),
    ]

    model = ForwardArchitecture(structure)      # param_dtype=jnp.bfloat16 for the bf16 path
    y = model(x)
    y = jax.block_until_ready(y)

    # Pure-JAX reference check of the sequential forward.
    ref = x
    ref = jnp.maximum(ref @ w1 + b1, 0.0)
    ref = jnp.maximum(ref @ w2 + b2, 0.0)
    ref = ref @ w3 + b3
    assert y.shape == (batch, out_dim)
    assert jnp.allclose(y, ref, atol=1e-5, rtol=1e-5)

    print("KERNEL_OK")
</pallas_src>

<mosaic_0001>
module attributes {stable_mosaic.version = 11 : i64} {
  func.func @_fused_mlp_kernel(%arg0: i32, %arg1: memref<32x32xf32, #tpu.memory_space<vmem>>, %arg2: memref<32x128xf32, #tpu.memory_space<vmem>>, %arg3: memref<1x128xf32, #tpu.memory_space<vmem>>, %arg4: memref<128x128xf32, #tpu.memory_space<vmem>>, %arg5: memref<1x128xf32, #tpu.memory_space<vmem>>, %arg6: memref<128x16xf32, #tpu.memory_space<vmem>>, %arg7: memref<1x16xf32, #tpu.memory_space<vmem>>, %arg8: memref<32x16xf32, #tpu.memory_space<vmem>>) attributes {dimension_semantics = [#tpu.dimension_semantics<parallel>], iteration_bounds = array<i64: 2>, scalar_prefetch = 0 : i64, scratch_operands = 0 : i64, tpu.core_type = #tpu.core_type<tc>, window_params = [{transform_indices = @transform_0, window_bounds = array<i64: 32, 32>}, {pipeline_mode = #tpu.pipeline_mode<synchronous>, transform_indices = @transform_1, window_bounds = array<i64: 32, 128>}, {pipeline_mode = #tpu.pipeline_mode<synchronous>, transform_indices = @transform_2, window_bounds = array<i64: 1, 128>}, {pipeline_mode = #tpu.pipeline_mode<synchronous>, transform_indices = @transform_3, window_bounds = array<i64: 128, 128>}, {pipeline_mode = #tpu.pipeline_mode<synchronous>, transform_indices = @transform_4, window_bounds = array<i64: 1, 128>}, {pipeline_mode = #tpu.pipeline_mode<synchronous>, transform_indices = @transform_5, window_bounds = array<i64: 128, 16>}, {pipeline_mode = #tpu.pipeline_mode<synchronous>, transform_indices = @transform_6, window_bounds = array<i64: 1, 16>}, {transform_indices = @transform_7, window_bounds = array<i64: 32, 16>}]} {
    %c0 = arith.constant 0 : index
    %c0_0 = arith.constant 0 : index
    %0 = vector.load %arg1[%c0, %c0_0] : memref<32x32xf32, #tpu.memory_space<vmem>>, vector<32x32xf32>
    %c0_1 = arith.constant 0 : index
    %c0_2 = arith.constant 0 : index
    %1 = vector.load %arg2[%c0_1, %c0_2] : memref<32x128xf32, #tpu.memory_space<vmem>>, vector<32x128xf32>
    %c0_3 = arith.constant 0 : index
    %c0_4 = arith.constant 0 : index
    %2 = vector.load %arg3[%c0_3, %c0_4] : memref<1x128xf32, #tpu.memory_space<vmem>>, vector<1x128xf32>
    %cst = arith.constant dense<0.000000e+00> : vector<32x128xf32>
    %3 = tpu.matmul %0, %1, %cst {dimension_numbers = #tpu.dot_dimension_numbers<[1], [0], [0], [1], [0, 0, 1, 1], [], []>} : vector<32x32xf32>, vector<32x128xf32>, vector<32x128xf32> -> vector<32x128xf32>
    %4 = vector.broadcast %2 : vector<1x128xf32> to vector<32x128xf32>
    %5 = arith.addf %3, %4 : vector<32x128xf32>
    %cst_5 = arith.constant 0.000000e+00 : f32
    %6 = vector.broadcast %cst_5 : f32 to vector<32x128xf32>
    %7 = arith.maximumf %5, %6 : vector<32x128xf32>
    %c0_6 = arith.constant 0 : index
    %c0_7 = arith.constant 0 : index
    %8 = vector.load %arg4[%c0_6, %c0_7] : memref<128x128xf32, #tpu.memory_space<vmem>>, vector<128x128xf32>
    %c0_8 = arith.constant 0 : index
    %c0_9 = arith.constant 0 : index
    %9 = vector.load %arg5[%c0_8, %c0_9] : memref<1x128xf32, #tpu.memory_space<vmem>>, vector<1x128xf32>
    %cst_10 = arith.constant dense<0.000000e+00> : vector<32x128xf32>
    %10 = tpu.matmul %7, %8, %cst_10 {dimension_numbers = #tpu.dot_dimension_numbers<[1], [0], [0], [1], [0, 0, 1, 1], [], []>} : vector<32x128xf32>, vector<128x128xf32>, vector<32x128xf32> -> vector<32x128xf32>
    %11 = vector.broadcast %9 : vector<1x128xf32> to vector<32x128xf32>
    %12 = arith.addf %10, %11 : vector<32x128xf32>
    %cst_11 = arith.constant 0.000000e+00 : f32
    %13 = vector.broadcast %cst_11 : f32 to vector<32x128xf32>
    %14 = arith.maximumf %12, %13 : vector<32x128xf32>
    %c0_12 = arith.constant 0 : index
    %c0_13 = arith.constant 0 : index
    %15 = vector.load %arg6[%c0_12, %c0_13] : memref<128x16xf32, #tpu.memory_space<vmem>>, vector<128x16xf32>
    %c0_14 = arith.constant 0 : index
    %c0_15 = arith.constant 0 : index
    %16 = vector.load %arg7[%c0_14, %c0_15] : memref<1x16xf32, #tpu.memory_space<vmem>>, vector<1x16xf32>
    %cst_16 = arith.constant dense<0.000000e+00> : vector<32x16xf32>
    %17 = tpu.matmul %14, %15, %cst_16 {dimension_numbers = #tpu.dot_dimension_numbers<[1], [0], [0], [1], [0, 0, 1, 1], [], []>} : vector<32x128xf32>, vector<128x16xf32>, vector<32x16xf32> -> vector<32x16xf32>
    %18 = vector.broadcast %16 : vector<1x16xf32> to vector<32x16xf32>
    %19 = arith.addf %17, %18 : vector<32x16xf32>
    %c0_17 = arith.constant 0 : index
    %c0_18 = arith.constant 0 : index
    %20 = vector.load %arg8[%c0_17, %c0_18] : memref<32x16xf32, #tpu.memory_space<vmem>>, vector<32x16xf32>
    tpu.vector_store %arg8[%c0_17, %c0_18], %19 {strides = array<i32>} : memref<32x16xf32, #tpu.memory_space<vmem>>, vector<32x16xf32>,
    return
  }
  func.func @transform_0(%arg0: i32) -> (i32, i32) {
    %c0_i32 = arith.constant 0 : i32
    %c0_i32_0 = arith.constant 0 : i32
    return %arg0, %c0_i32 : i32, i32
  }
  func.func @transform_1(%arg0: i32) -> (i32, i32) {
    %c0_i32 = arith.constant 0 : i32
    %c0_i32_0 = arith.constant 0 : i32
    %c0_i32_1 = arith.constant 0 : i32
    return %c0_i32, %c0_i32_0 : i32, i32
  }
  func.func @transform_2(%arg0: i32) -> (i32, i32) {
    %c0_i32 = arith.constant 0 : i32
    %c0_i32_0 = arith.constant 0 : i32
    %c0_i32_1 = arith.constant 0 : i32
    return %c0_i32, %c0_i32_0 : i32, i32
  }
  func.func @transform_3(%arg0: i32) -> (i32, i32) {
    %c0_i32 = arith.constant 0 : i32
    %c0_i32_0 = arith.constant 0 : i32
    %c0_i32_1 = arith.constant 0 : i32
    return %c0_i32, %c0_i32_0 : i32, i32
  }
  func.func @transform_4(%arg0: i32) -> (i32, i32) {
    %c0_i32 = arith.constant 0 : i32
    %c0_i32_0 = arith.constant 0 : i32
    %c0_i32_1 = arith.constant 0 : i32
    return %c0_i32, %c0_i32_0 : i32, i32
  }
  func.func @transform_5(%arg0: i32) -> (i32, i32) {
    %c0_i32 = arith.constant 0 : i32
    %c0_i32_0 = arith.constant 0 : i32
    %c0_i32_1 = arith.constant 0 : i32
    return %c0_i32, %c0_i32_0 : i32, i32
  }
  func.func @transform_6(%arg0: i32) -> (i32, i32) {
    %c0_i32 = arith.constant 0 : i32
    %c0_i32_0 = arith.constant 0 : i32
    %c0_i32_1 = arith.constant 0 : i32
    return %c0_i32, %c0_i32_0 : i32, i32
  }
  func.func @transform_7(%arg0: i32) -> (i32, i32) {
    %c0_i32 = arith.constant 0 : i32
    %c0_i32_0 = arith.constant 0 : i32
    return %arg0, %c0_i32 : i32, i32
  }
}

</mosaic_0001>

<bundles_post_ra>
// kernel: _forward_jit.1
= control target key start
LH: loop header
LB: loop body
LE: loop exit
PB: predicated region body
PF: predicated region fallthrough
CT: control target
= control target key end

     0   :  { %s964_s24 = smov 0   ;;  %s1109_s0 = inlined_call_operand.vmem [shape: f32[64,32], index: 0, kind: input, shape index: {}]   ;;  %s1110_s1 = inlined_call_operand.vmem [shape: f32[32,128], index: 1, kind: input, shape index: {}]   ;;  %s1111_s2 = inlined_call_operand.vmem [shape: f32[1,128], index: 2, kind: input, shape index: {}]   ;;  %s1112_s3 = inlined_call_operand.vmem [shape: f32[128,128], index: 3, kind: input, shape index: {}]   ;;  %s1113_s4 = inlined_call_operand.vmem [shape: f32[1,128], index: 4, kind: input, shape index: {}]   ;;  %s1114_s5 = inlined_call_operand.vmem [shape: f32[128,16], index: 5, kind: input, shape index: {}]   ;;  %s1115_s6 = inlined_call_operand.vmem [shape: f32[1,16], index: 6, kind: input, shape index: {}]   ;;  %s1116_s7 = inlined_call_operand.vmem [shape: f32[64,16], index: 7, kind: output, shape index: {}]  }
   0x1 LB: > { %s680_s25 = sadd.s32 4294967295, %s922_s24   ;;  %p684_p0 = scmp.ge.s32.totalorder %s922_s24, 1  ;;  %s922_s24 = sphi %s964_s24, %s17_s24  }
   0x2   : > { %p238_p1 = scmp.lt.s32.totalorder %s922_s24, 3 }
   0x4   : > { %p239_p2 = pnand %p684_p0, %p238_p1 }
   0x5   : > { %v286_v0 = vld [vmem:[%s1110_s1] sm:$0xff] (!%p239_p2)  ;;  %v287_v1 = vld [vmem:[%s1110_s1 + $0x8] sm:$0xff] (!%p239_p2)  ;;  %v288_v2 = vld [vmem:[%s1110_s1 + $0x10] sm:$0xff] (!%p239_p2)  ;;  %s685_s9 = sshll.u32 (!%p239_p2), %s680_s25, 2  ;;  %vm297_vm0 = vcmask (!%p239_p2), 261120   ;;  %vm619_vm1 = vcmask (!%p239_p2), 130048  }
   0x6   : > { %242 = sbr.rel (%p239_p2) target bundleno = 674 (0x2a2), region = 48  ;;  %v836_v3 = vpack.c.bf16 (!%p239_p2), %v287_v1, %v286_v0  ;;  %v289_v4 = vld [vmem:[%s1110_s1 + $0x18] sm:$0xff] (!%p239_p2)  ;;  %p271_p3 = scmp.lt.s32.totalorder (!%p239_p2), %s685_s9, 7  ;;  %v399_v5 = vld [vmem:[%s1112_s3] sm:$0xff] (!%p239_p2)  ;;  %v400_v6 = vld [vmem:[%s1112_s3 + $0x8] sm:$0xff] (!%p239_p2) }
   0x7   : > { %v840_v7 = vpack.c.bf16 (!%p239_p2), %v289_v4, %v288_v2  ;;  %v844_v8 = vpack.c.bf16 (!%p239_p2), %v400_v6, %v399_v5  ;;  %v401_v9 = vld [vmem:[%s1112_s3 + $0x10] sm:$0xff] (!%p239_p2)  ;;  %v402_v10 = vld [vmem:[%s1112_s3 + $0x18] sm:$0xff] (!%p239_p2)  ;;  %v403_v12 = vld [vmem:[%s1112_s3 + $0x20] sm:$0xff] (!%p239_p2) }
   0x8   : > { %837 = vmatprep.subr.bf16.mxu0 (!%p239_p2), %v836_v3  ;;  %v848_v11 = vpack.c.bf16 (!%p239_p2), %v402_v10, %v401_v9  ;;  %v404_v13 = vld [vmem:[%s1112_s3 + $0x28] sm:$0xff] (!%p239_p2)  ;;  %v405_v16 = vld [vmem:[%s1112_s3 + $0x30] sm:$0xff] (!%p239_p2)  ;;  %v406_v17 = vld [vmem:[%s1112_s3 + $0x38] sm:$0xff] (!%p239_p2) }
   0x9   : > { %839 = vmatpush3.bf16.msra.mxu0 (!%p239_p2), %v836_v3  ;;  %845 = vmatprep.subr.bf16.mxu1 (!%p239_p2), %v844_v8  ;;  %v852_v14 = vpack.c.bf16 (!%p239_p2), %v404_v13, %v403_v12  ;;  %v856_v20 = vpack.c.bf16 (!%p239_p2), %v406_v17, %v405_v16  ;;  %v407_v21 = vld [vmem:[%s1112_s3 + $0x40] sm:$0xff] (!%p239_p2)  ;;  %v408_v22 = vld [vmem:[%s1112_s3 + $0x48] sm:$0xff] (!%p239_p2)  ;;  %v409_v25 = vld [vmem:[%s1112_s3 + $0x50] sm:$0xff] (!%p239_p2) }
   0xa   : > { %841 = vmatprep.subr.bf16.mxu0 (!%p239_p2), %v840_v7  ;;  %847 = vmatpush3.bf16.msra.mxu1 (!%p239_p2), %v844_v8  ;;  %v860_v24 = vpack.c.bf16 (!%p239_p2), %v408_v22, %v407_v21  ;;  %v410_v26 = vld [vmem:[%s1112_s3 + $0x58] sm:$0xff] (!%p239_p2)  ;;  %v411_v28 = vld [vmem:[%s1112_s3 + $0x60] sm:$0xff] (!%p239_p2)  ;;  %v412_v29 = vld [vmem:[%s1112_s3 + $0x68] sm:$0xff] (!%p239_p2) }
   0xb   : > { %849 = vmatprep.subr.bf16.mxu1 (!%p239_p2), %v848_v11  ;;  %v864_v27 = vpack.c.bf16 (!%p239_p2), %v410_v26, %v409_v25  ;;  %v868_v30 = vpack.c.bf16 (!%p239_p2), %v412_v29, %v411_v28  ;;  %v413_v31 = vld [vmem:[%s1112_s3 + $0x70] sm:$0xff] (!%p239_p2)  ;;  %v414_v32 = vld [vmem:[%s1112_s3 + $0x78] sm:$0xff] (!%p239_p2)  ;;  %v511_v34 = vld [vmem:[%s1114_s5] sm:$0xff] (!%p239_p2) }
   0xc   : > { %v872_v33 = vpack.c.bf16 (!%p239_p2), %v414_v32, %v413_v31  ;;  %v512_v35 = vld [vmem:[%s1114_s5 + $0x8] sm:$0xff] (!%p239_p2)  ;;  %v513_v36 = vld [vmem:[%s1114_s5 + $0x10] sm:$0xff] (!%p239_p2)  ;;  %v514_v38 = vld [vmem:[%s1114_s5 + $0x18] sm:$0xff] (!%p239_p2) }
   0xd   : > { %s1118_s9 = smov (!%p271_p3, %s685_s9), 7  ;;  %843 = vmatpush3.bf16.msra.mxu0 %v840_v7  ;;  %v876_v37 = vpack.c.bf16 %v512_v35, %v511_v34  ;;  %v880_v39 = vpack.c.bf16 %v514_v38, %v513_v36  ;;  %v515_v40 = vld [vmem:[%s1114_s5 + $0x20] sm:$0xff]  ;;  %v516_v41 = vld [vmem:[%s1114_s5 + $0x28] sm:$0xff]  ;;  %v517_v43 = vld [vmem:[%s1114_s5 + $0x30] sm:$0xff] }
   0xe   : > { %s686_s25 = sshll.u32 %s1118_s9, 3  ;;  %851 = vmatpush3.bf16.msra.mxu1 %v848_v11  ;;  %v884_v42 = vpack.c.bf16 %v516_v41, %v515_v40  ;;  %v518_v44 = vld [vmem:[%s1114_s5 + $0x38] sm:$0xff]  ;;  %v519_v46 = vld [vmem:[%s1114_s5 + $0x40] sm:$0xff]  ;;  %v520_v47 = vld [vmem:[%s1114_s5 + $0x48] sm:$0xff] }
   0xf   : > { %s274_s28 = scalar_lea.vmem %s1109_s0, %s686_s25  ;;  %853 = vmatprep.subr.bf16.mxu1 %v852_v14  ;;  %877 = vmatprep.subr.bf16.mxu0 %v876_v37  ;;  %v888_v45 = vpack.c.bf16 %v518_v44, %v517_v43  ;;  %v892_v48 = vpack.c.bf16 %v520_v47, %v519_v46  ;;  %v521_v49 = vld [vmem:[%s1114_s5 + $0x50] sm:$0xff]  ;;  %v522_v50 = vld [vmem:[%s1114_s5 + $0x58] sm:$0xff]  ;;  %v523_v52 = vld [vmem:[%s1114_s5 + $0x60] sm:$0xff]  ;;  %s280_s29 = scalar_lea.vmem %s1116_s7, %s686_s25 }
  0x10   : > { %v282_v15 = vld [vmem:[%s274_s28] sm:$0xff]  ;;  %v283_v18 = vld [vmem:[%s274_s28 + $0x8] sm:$0xff]  ;;  %v284_v19 = vld [vmem:[%s274_s28 + $0x10] sm:$0xff]  ;;  %v896_v51 = vpack.c.bf16 %v522_v50, %v521_v49 }
  0x11   : > { %754 = vmatprep.mubr.msk.f32.mxu0 %vm297_vm0, %v282_v15  ;;  %v285_v23 = vld [vmem:[%s274_s28 + $0x18] sm:$0xff]  ;;  %v524_v53 = vld [vmem:[%s1114_s5 + $0x68] sm:$0xff]  ;;  %v689_v55 = vld [vmem:[%s1111_s2] ss:$0 sm:$0xff] }
  0x12   : > { %755 = vmatmul.mubr.msk.f32.vlgmr.msra.gmra.mrb[0].mxu0 %vm297_vm0, %v283_v18  ;;  %855 = vmatpush3.bf16.msra.mxu1 %v852_v14  ;;  %v900_v54 = vpack.c.bf16 %v524_v53, %v523_v52  ;;  %v525_v4 = vld [vmem:[%s1114_s5 + $0x70] sm:$0xff]  ;;  %v526_v5 = vld [vmem:[%s1114_s5 + $0x78] sm:$0xff]  ;;  %v694_v7 = vld [vmem:[%s1113_s4] ss:$0 sm:$0xff] }
  0x13   : > { %757 = vmatprep.mubr.msk.f32.mxu0 %vm297_vm0, %v284_v19  ;;  %857 = vmatprep.subr.bf16.mxu1 %v856_v20  ;;  %v904_v6 = vpack.c.bf16 %v526_v5, %v525_v4 }
  0x14   : > { %879 = vmatpush3.bf16.msra.mxu0 %v876_v37 }
  0x15   : > { %881 = vmatprep.subr.bf16.mxu0 %v880_v39 }
  0x16   : > { %758 = vmatmul.mubr.msk.f32.gmra.mrb[2].mxu0 %vm297_vm0, %v285_v23  ;;  %859 = vmatpush3.bf16.msra.mxu1 %v856_v20  ;;  %v695_v20 = vld [vmem:[%s1115_s6] ss:$0 sm:$0xff] }
  0x17   : > { %861 = vmatprep.subr.bf16.mxu1 %v860_v24 }
  0x18   : > { %883 = vmatpush3.bf16.msra.mxu0 %v880_v39 }
  0x19   : > { %885 = vmatprep.subr.bf16.mxu0 %v884_v42 }
  0x1a   : > { %863 = vmatpush3.bf16.msra.mxu1 %v860_v24 }
  0x1b   : > { %865 = vmatprep.subr.bf16.mxu1 %v864_v27 }
  0x1c   : > { %887 = vmatpush3.bf16.msra.mxu0 %v884_v42 }
  0x1d   : > { %889 = vmatprep.subr.bf16.mxu0 %v888_v45 }
  0x1e   : > { %867 = vmatpush3.bf16.msra.mxu1 %v864_v27 }
  0x1f   : > { %869 = vmatprep.subr.bf16.mxu1 %v868_v30 }
  0x20   : > { %891 = vmatpush3.bf16.msra.mxu0 %v888_v45 }
  0x21   : > { %893 = vmatprep.subr.bf16.mxu0 %v892_v48 }
  0x22   : > { %871 = vmatpush3.bf16.msra.mxu1 %v868_v30 }
  0x23   : > { %873 = vmatprep.subr.bf16.mxu1 %v872_v33 }
  0x24   : > { %895 = vmatpush3.bf16.msra.mxu0 %v892_v48 }
  0x25   : > { %897 = vmatprep.subr.bf16.mxu0 %v896_v51 }
  0x26   : > { %875 = vmatpush3.bf16.msra.mxu1 %v872_v33 }
  0x28   : > { %899 = vmatpush3.bf16.msra.mxu0 %v896_v51 }
  0x29   : > { %901 = vmatprep.subr.bf16.mxu0 %v900_v54 }
  0x2c   : > { %903 = vmatpush3.bf16.msra.mxu0 %v900_v54 }
  0x2d   : > { %905 = vmatprep.subr.bf16.mxu0 %v904_v6 }
  0x30   : > { %907 = vmatpush3.bf16.msra.mxu0 %v904_v6 }
  0xe5   : > { %v756_v56 = vpop.f32.mrb[0].mxu0 }
  0xe6   : > { %v382_v57 = vadd.f32 %v756_v56, %v689_v55  ;;  %v376_v58 = vpop.f32.mrb[1].mxu0 }
  0xe7   : > { %v377_v59 = vadd.f32 %v689_v55, %v376_v58 }
  0xe8   : > { %v396_v62 = vmax.f32 %v382_v57, 0.0 }
  0xe9   : > { %v759_v60 = vpop.f32.mrb[2].mxu0  ;;  %v395_v61 = vmax.f32 %v377_v59, 0.0 }
  0xea   : > { %v392_v63 = vadd.f32 %v759_v60, %v689_v55  ;;  %v386_v0 = vpop.f32.mrb[3].mxu0 }
  0xeb   : > { %v387_v1 = vadd.f32 %v689_v55, %v386_v0  ;;  %792 = vmatprep.mubr.f32.mxu1 %v395_v61 }
  0xec   : > { %793 = vmatmul.mubr.f32.vlgmr.msra.gmra.mrb[0].mxu1 %v396_v62  ;;  %v398_v3 = vmax.f32 %v392_v63, 0.0 }
  0xed   : > { %v397_v2 = vmax.f32 %v387_v1, 0.0 }
  0xef   : > { %795 = vmatprep.mubr.f32.mxu1 %v397_v2 }
  0xf0   : > { %796 = vmatmul.mubr.f32.gmra.mrb[2].mxu1 %v398_v3 }
 0x1bf   : > { %v794_v8 = vpop.f32.mrb[0].mxu1 }
 0x1c0   : > { %v494_v9 = vadd.f32 %v794_v8, %v694_v7  ;;  %v488_v10 = vpop.f32.mrb[1].mxu1 }
 0x1c1   : > { %v489_v11 = vadd.f32 %v694_v7, %v488_v10 }
 0x1c2   : > { %v508_v14 = vmax.f32 %v494_v9, 0.0 }
 0x1c3   : > { %v507_v12 = vmax.f32 %v489_v11, 0.0  ;;  %v797_v13 = vpop.f32.mrb[2].mxu1 }
 0x1c4   : > { %v504_v15 = vadd.f32 %v797_v13, %v694_v7  ;;  %v498_v16 = vpop.f32.mrb[3].mxu1 }
 0x1c5   : > { %v499_v17 = vadd.f32 %v694_v7, %v498_v16  ;;  %830 = vmatprep.mubr.f32.mxu0 %v507_v12 }
 0x1c6   : > { %831 = vmatmul.mubr.f32.vlgmr.msra.gmra.mrb[4].mxu0 %v508_v14  ;;  %v510_v19 = vmax.f32 %v504_v15, 0.0 }
 0x1c7   : > { %v509_v18 = vmax.f32 %v499_v17, 0.0 }
 0x1c9   : > { %833 = vmatprep.mubr.f32.mxu0 %v509_v18 }
 0x1ca   : > { %834 = vmatmul.mubr.f32.gmra.mrb[6].mxu0 %v510_v19 }
 0x299   : > { %v832_v21 = vpop.f32.mrb[4].mxu0 }
 0x29a   : > { %v600_v22 = vpop.f32.mrb[5].mxu0  ;;  %v606_v24 = vadd.f32 %v832_v21, %v695_v20 }
 0x29b   : > { %v601_v23 = vadd.f32 %v695_v20, %v600_v22 }
 0x29c   : > { %621 = vst.msk [vmem:[%s280_s29 + $0x8] sm:$0xff] %vm619_vm1, %v606_v24 }
 0x29d   : > { %620 = vst.msk [vmem:[%s280_s29] sm:$0xff] %vm619_vm1, %v601_v23  ;;  %v835_v25 = vpop.f32.mrb[6].mxu0 }
 0x29e   : > { %v610_v26 = vpop.f32.mrb[7].mxu0  ;;  %v616_v28 = vadd.f32 %v835_v25, %v695_v20 }
 0x29f   : > { %v611_v27 = vadd.f32 %v695_v20, %v610_v26 }
 0x2a0   : > { %623 = vst.msk [vmem:[%s280_s29 + $0x18] sm:$0xff] %vm619_vm1, %v616_v28 }
 0x2a1   : > { %622 = vst.msk [vmem:[%s280_s29 + $0x10] sm:$0xff] %vm619_vm1, %v611_v27 }
 0x2a2 PF: > { %s17_s24 = sadd.s32 1, %s922_s24  }
 0x2a3   : > { %p14_p4 = scmp.ge.s32.totalorder %s17_s24, 4  }
 0x2a5   :  { %16 = sbr.rel (!%p14_p4) target bundleno = 1 (0x1), region = 78 }

</bundles_post_ra>
